<compile_context>
chip_gen: v6e
topology: v6e:2x2x1
jax: 0.10.0
libtpu: 0.0.40
codegen_flags: <defaults>
</compile_context>

<pallas_src>
import jax
import jax.numpy as jnp
from jax.experimental import pallas as pl
from jax.experimental.pallas import tpu as pltpu

_LANES = 128
_F32_TILE = 8 * _LANES  # one (8, 128) f32 tile = 1024 elements


def _identity_kernel(x_ref, o_ref):
    # Pure passthrough: load the whole VMEM block, store it back out.
    o_ref[...] = x_ref[...]


def _pallas_identity(x2d: jax.Array) -> jax.Array:
    """Gridless full-array identity copy through VMEM."""
    nbytes = 2 * x2d.size * jnp.dtype(x2d.dtype).itemsize  # read + write
    return pl.pallas_call(
        _identity_kernel,
        out_shape=jax.ShapeDtypeStruct(x2d.shape, x2d.dtype),
        in_specs=[pl.BlockSpec(memory_space=pltpu.MemorySpace.VMEM)],
        out_specs=pl.BlockSpec(memory_space=pltpu.MemorySpace.VMEM),
        compiler_params=pltpu.CompilerParams(has_side_effects=True),
        cost_estimate=pl.CostEstimate(
            flops=0, transcendentals=0, bytes_accessed=nbytes
        ),
    )(x2d)


def _lane_dense_view(inputs: jax.Array) -> jax.Array:
    """Flatten to a lane-dense (n, 128) slab, padding to an 8x128 tile."""
    flat = inputs.reshape(-1)
    total = flat.shape[0]
    padded = ((total + _F32_TILE - 1) // _F32_TILE) * _F32_TILE
    if padded != total:
        flat = jnp.pad(flat, (0, padded - total))
    return flat.reshape(padded // _LANES, _LANES)


@jax.jit
def _device_identity(inputs: jax.Array) -> jax.Array:
    """Single compiled dispatch: bitcast-reshape (+pad) then Pallas copy."""
    return _pallas_identity(_lane_dense_view(inputs))


class TestModelPallas:
    """Pallas equivalent of the (parameter-free) PyTorch `test_model`."""

    def __init__(self):
        # Reference __init__ defines no parameters.
        pass

    def forward(self, inputs: jax.Array):
        # Mirror `print(inputs.shape)` from the reference forward.
        print(inputs.shape)

        # One jitted dispatch; kernel is guaranteed to execute via
        # has_side_effects=True even though the result is discarded.
        _device_identity(inputs)

        # Reference forward returns None.
        return None


if __name__ == "__main__":
    key = jax.random.PRNGKey(0)
    # Small NCHW input consistent with a conv-style module: batch=2,
    # channels=4, spatial=16x16.
    x = jax.random.normal(key, (2, 4, 16, 16), dtype=jnp.float32)

    model = TestModelPallas()
    result = model.forward(x)
    assert result is None  # matches PyTorch forward's return value

    # Correctness check of the kernel itself (kept out of forward's hot path):
    y2d = _device_identity(x)
    jax.block_until_ready(y2d)
    assert jnp.array_equal(y2d.reshape(-1)[: x.size].reshape(x.shape), x)

    print("KERNEL_OK")
</pallas_src>

<mosaic_0001>
module attributes {stable_mosaic.version = 11 : i64} {
  func.func @_identity_kernel(%arg0: memref<16x128xf32, #tpu.memory_space<vmem>>, %arg1: memref<16x128xf32, #tpu.memory_space<vmem>>) attributes {dimension_semantics = [], scalar_prefetch = 0 : i64, scratch_operands = 0 : i64, tpu.core_type = #tpu.core_type<tc>} {
    %c0 = arith.constant 0 : index
    %c0_0 = arith.constant 0 : index
    %0 = vector.load %arg0[%c0, %c0_0] : memref<16x128xf32, #tpu.memory_space<vmem>>, vector<16x128xf32>
    %c0_1 = arith.constant 0 : index
    %c0_2 = arith.constant 0 : index
    %1 = vector.load %arg1[%c0_1, %c0_2] : memref<16x128xf32, #tpu.memory_space<vmem>>, vector<16x128xf32>
    tpu.vector_store %arg1[%c0_1, %c0_2], %0 {strides = array<i32>} : memref<16x128xf32, #tpu.memory_space<vmem>>, vector<16x128xf32>,
    return
  }
}

</mosaic_0001>

<bundles_post_ra>
// kernel: _device_identity.1
= control target key start
LH: loop header
LB: loop body
LE: loop exit
PB: predicated region body
PF: predicated region fallthrough
CT: control target
= control target key end

     0   :  { %s76_s0 = inlined_call_operand.vmem [shape: f32[16,128], index: 0, kind: input, shape index: {}]   ;;  %s77_s1 = inlined_call_operand.hbm [shape: f32[16,128], index: 1, kind: output, shape index: {}]  }
   0x1   :  { %v9_v0 = vld [vmem:[%s76_s0] sm:$0xff]  ;;  %v10_v1 = vld [vmem:[%s76_s0 + $0x8] sm:$0xff] }
   0x2   :  { %6 = vsyncpa [#allocation3], 0  ;;  %11 = vst [vmem:[#allocation2] sm:$0xff] %v9_v0  ;;  %s54_s10 = smov [#allocation2]  }
   0x3   :  { %12 = vst [vmem:[#allocation2 + $0x8] sm:$0xff] %v10_v1  ;;  %s18_s11 = sshll.u32 %s54_s10, 4  ;;  %s19_s11 = int_to_ptr.vmem [resolvable:$true] %s18_s11 }
   0x4   :  { %s32_s12 = scalar_lea.vmem %s19_s11, 256  ;;  %p37_p1 = scmp.lt.s32.totalorder %s19_s11, %s19_s11 }
   0x5   :  { %p33_p0 = scmp.ne.s32.totalorder %s19_s11, %s32_s12  ;;  %p38_p2 = scmp.lt.s32.totalorder %s32_s12, %s32_s12 }
   0x7   :  { %p39_p3 = por %p38_p2, %p37_p1 }
   0x9   :  { %p40_p4 = pnand %p39_p3, %p33_p0 }
   0xb   :  { %43 = shalt.err (!%p40_p4)
}
   0xc   :  { %s55_s13 = smov 128   ;;  %s56_s14 = smov 8  }
   0xd   :  { %24 = dma.vmem_to_hbm [thread:$0]  %s19_s11, 256, %s77_s1, [#allocation3], %s55_s13, %s55_s13, %s56_s14  }
   0xe   :  { %52 = dma.done.wait [#allocation3], 256  }
   0xf   :  { %53 = vsyncadd [#allocation3], 4294967040 }
  0x10   :  { %28 = vsyncpa [#allocation3], 1 }

</bundles_post_ra>
